<compile_context>
chip_gen: v5e
topology: v5e:2x2
jax: 0.10.0
libtpu: 0.0.40
codegen_flags: <defaults>
</compile_context>

<pallas_src>
import jax
import jax.numpy as jnp
from jax.experimental import pallas as pl
from jax.experimental.pallas import tpu as pltpu


_LANE = 128
_SMALL_H = 512          # below this, padded output writeback would dominate HBM traffic
_MAX_TILE_B = 2048


def _round_up(x: int, m: int) -> int:
    return (x + m - 1) // m * m


def _sublane_rows(dtype) -> int:
    # Rows per packed sublane: 8 (f32/i32), 16 (bf16), 32 (int8 / fp8).
    return max(8, 32 // max(1, jnp.dtype(dtype).itemsize))


def _vmem_budget_bytes() -> int:
    try:
        cap = pltpu.get_tpu_info().vmem_capacity_bytes
    except Exception:
        cap = 128 * 1024 * 1024
    if cap <= 64 * 1024 * 1024:          # v7x-class: 64 MiB per TensorCore
        return 28 * 1024 * 1024
    return 56 * 1024 * 1024              # v5e / v6e: 128 MiB physical VMEM


def _block_spec(shape, index_map, buffers=None):
    """BlockSpec with optional pipelining depth; falls back if unsupported."""
    if buffers is not None:
        try:
            return pl.BlockSpec(shape, index_map, pipeline_mode=pl.Buffered(buffers))
        except TypeError:
            pass
    return pl.BlockSpec(shape, index_map)


def _linear_kernel(x_ref, w_ref, b_ref, o_ref):
    # One batch tile per grid step: MXU matmul with f32 accumulation, then a
    # broadcasted f32 bias add on the VPU, cast back to the output dtype.
    o_ref[...] = (
        jnp.dot(x_ref[...], w_ref[...], preferred_element_type=jnp.float32)
        + b_ref[...]
    ).astype(o_ref.dtype)


def prepare_classifier_params(w: jax.Array, b: jax.Array, x_dtype) -> dict:
    """One-time parameter prep (pad / cast) — call at setup, not per forward."""
    H, C = w.shape
    lane_dense = H > _SMALL_H
    c_out = _round_up(max(C, _LANE), _LANE) if lane_dense else C
    w_k = jnp.pad(w, ((0, 0), (0, c_out - C))).astype(x_dtype)
    b_k = jnp.pad(jnp.reshape(b, (1, C)), ((0, 0), (0, c_out - C))).astype(jnp.float32)
    return {"w": w_k, "b": b_k, "num_classes": C, "lane_dense": lane_dense}


def classifier_forward(x: jax.Array, params: dict) -> jax.Array:
    """Pallas equivalent of Classifier.forward(x) with predictor = Linear(H, C)."""
    w, b = params["w"], params["b"]
    C, lane_dense = params["num_classes"], params["lane_dense"]
    B, H = x.shape
    Hw, c_out = w.shape
    assert H == Hw, "hidden dim mismatch"

    out_dtype = x.dtype
    in_item = jnp.dtype(x.dtype).itemsize
    out_item = jnp.dtype(out_dtype).itemsize
    sublane = _sublane_rows(x.dtype)

    # ---- batch tile sizing against the per-generation VMEM budget ----------
    budget = _vmem_budget_bytes()
    w_bufs = 1 if lane_dense else 2
    resident = w_bufs * H * c_out * in_item + 2 * c_out * 4
    per_row = 2 * (H * in_item + c_out * out_item)       # double-buffered x + out
    avail = max(per_row * sublane, budget - resident)
    tile_b = max(sublane, min(_MAX_TILE_B, (avail // per_row) // sublane * sublane))
    # TODO(synk): if H grows so large that even a sublane-high x tile plus the
    # resident W no longer fits VMEM, add a trailing "arbitrary" K-reduction
    # grid axis with an f32 VMEM accumulator and fold the bias into the finalize.

    # Keep >= 2 grid steps when the batch is large enough (second v7x TC +
    # DMA/compute overlap); free / no-op on v5e / v6e.
    if B >= 2 * sublane:
        tile_b = min(tile_b, _round_up((B + 1) // 2, sublane))
    if tile_b >= B:
        tile_b = B                       # single full-dim block (no alignment constraint)
    grid_steps = pl.cdiv(B, tile_b)      # ragged last block is masked by Pallas

    # Deeper x pipeline only when large H forces tiny batch tiles over many steps.
    x_bufs = 3 if (tile_b <= 128 and grid_steps > 2) else None

    vmem_need = (
        (x_bufs or 2) * tile_b * H * in_item
        + w_bufs * H * c_out * in_item
        + 2 * c_out * 4
        + 2 * tile_b * c_out * out_item
    )
    vmem_limit = int(min(budget, max(int(1.25 * vmem_need), 16 * 1024 * 1024)))

    cost = pl.CostEstimate(
        flops=2 * B * H * c_out,
        transcendentals=0,
        bytes_accessed=(
            B * H * in_item + H * c_out * in_item + c_out * 4 + B * c_out * out_item
        ),
    )

    def _call(extra_buffering: bool):
        wb = 1 if (lane_dense and extra_buffering) else None
        xb = x_bufs if extra_buffering else None
        return pl.pallas_call(
            _linear_kernel,
            out_shape=jax.ShapeDtypeStruct((B, c_out), out_dtype),
            grid=(grid_steps,),
            in_specs=[
                _block_spec((tile_b, H), lambda i: (i, 0), buffers=xb),   # batch-tiled x
                _block_spec((H, c_out), lambda i: (0, 0), buffers=wb),    # resident W
                _block_spec((1, c_out), lambda i: (0, 0), buffers=wb),    # resident bias
            ],
            out_specs=pl.BlockSpec((tile_b, c_out), lambda i: (i, 0)),
            compiler_params=pltpu.CompilerParams(
                dimension_semantics=("parallel",),
                vmem_limit_bytes=vmem_limit,
            ),
            cost_estimate=cost,
        )(x, w, b)

    try:
        logits = _call(True)
    except Exception:  # pipeline_mode / Buffered unsupported -> plain double-buffering
        logits = _call(False)

    # Small-H path already has the exact shape; lane-dense path drops zero lanes.
    return logits if c_out == C else logits[:, :C]


if __name__ == "__main__":
    def _check(B, H, C, atol):
        key = jax.random.fold_in(jax.random.PRNGKey(0), B * 7919 + H)
        kx, kw, kb = jax.random.split(key, 3)
        bound = float(H) ** -0.5  # nn.Linear default init range
        x = jax.random.normal(kx, (B, H), dtype=jnp.float32)
        w = jax.random.uniform(kw, (H, C), minval=-bound, maxval=bound, dtype=jnp.float32)
        b = jax.random.uniform(kb, (C,), minval=-bound, maxval=bound, dtype=jnp.float32)

        params = prepare_classifier_params(w, b, x.dtype)   # one-time setup
        logits = classifier_forward(x, params)
        jax.block_until_ready(logits)

        ref = x @ w + b
        assert logits.shape == (B, C)
        assert logits.dtype == x.dtype
        assert jnp.allclose(logits, ref, atol=atol, rtol=atol), (
            f"mismatch vs reference for B={B}, H={H}, C={C}")

    # Small-H path: true-C output (no lane padding, no trailing slice).
    _check(B=8, H=32, C=2, atol=1e-5)
    # Large-H path: lane-dense padded output, single-buffered resident W,
    # ragged last batch block and a 2-step "parallel" grid.
    _check(B=20, H=1024, C=2, atol=2e-2)

    print("KERNEL_OK")
</pallas_src>

<mosaic_0001>
module attributes {stable_mosaic.version = 11 : i64} {
  func.func @_linear_kernel(%arg0: i32, %arg1: memref<8x32xf32, #tpu.memory_space<vmem>>, %arg2: memref<32x2xf32, #tpu.memory_space<vmem>>, %arg3: memref<1x2xf32, #tpu.memory_space<vmem>>, %arg4: memref<8x2xf32, #tpu.memory_space<vmem>>) attributes {dimension_semantics = [#tpu.dimension_semantics<parallel>], iteration_bounds = array<i64: 1>, scalar_prefetch = 0 : i64, scratch_operands = 0 : i64, tpu.core_type = #tpu.core_type<tc>, window_params = [{transform_indices = @transform_0, window_bounds = array<i64: 8, 32>}, {pipeline_mode = #tpu.pipeline_mode<synchronous>, transform_indices = @transform_1, window_bounds = array<i64: 32, 2>}, {pipeline_mode = #tpu.pipeline_mode<synchronous>, transform_indices = @transform_2, window_bounds = array<i64: 1, 2>}, {transform_indices = @transform_3, window_bounds = array<i64: 8, 2>}]} {
    %c0 = arith.constant 0 : index
    %c0_0 = arith.constant 0 : index
    %0 = vector.load %arg1[%c0, %c0_0] : memref<8x32xf32, #tpu.memory_space<vmem>>, vector<8x32xf32>
    %c0_1 = arith.constant 0 : index
    %c0_2 = arith.constant 0 : index
    %1 = vector.load %arg2[%c0_1, %c0_2] : memref<32x2xf32, #tpu.memory_space<vmem>>, vector<32x2xf32>
    %cst = arith.constant dense<0.000000e+00> : vector<8x2xf32>
    %2 = tpu.matmul %0, %1, %cst {dimension_numbers = #tpu.dot_dimension_numbers<[1], [0], [0], [1], [0, 0, 1, 1], [], []>} : vector<8x32xf32>, vector<32x2xf32>, vector<8x2xf32> -> vector<8x2xf32>
    %c0_3 = arith.constant 0 : index
    %c0_4 = arith.constant 0 : index
    %3 = vector.load %arg3[%c0_3, %c0_4] : memref<1x2xf32, #tpu.memory_space<vmem>>, vector<1x2xf32>
    %4 = vector.broadcast %3 : vector<1x2xf32> to vector<8x2xf32>
    %5 = arith.addf %2, %4 : vector<8x2xf32>
    %c0_5 = arith.constant 0 : index
    %c0_6 = arith.constant 0 : index
    %6 = vector.load %arg4[%c0_5, %c0_6] : memref<8x2xf32, #tpu.memory_space<vmem>>, vector<8x2xf32>
    tpu.vector_store %arg4[%c0_5, %c0_6], %5 {strides = array<i32>} : memref<8x2xf32, #tpu.memory_space<vmem>>, vector<8x2xf32>,
    return
  }
  func.func @transform_0(%arg0: i32) -> (i32, i32) {
    %c0_i32 = arith.constant 0 : i32
    %c0_i32_0 = arith.constant 0 : i32
    return %arg0, %c0_i32 : i32, i32
  }
  func.func @transform_1(%arg0: i32) -> (i32, i32) {
    %c0_i32 = arith.constant 0 : i32
    %c0_i32_0 = arith.constant 0 : i32
    %c0_i32_1 = arith.constant 0 : i32
    return %c0_i32, %c0_i32_0 : i32, i32
  }
  func.func @transform_2(%arg0: i32) -> (i32, i32) {
    %c0_i32 = arith.constant 0 : i32
    %c0_i32_0 = arith.constant 0 : i32
    %c0_i32_1 = arith.constant 0 : i32
    return %c0_i32, %c0_i32_0 : i32, i32
  }
  func.func @transform_3(%arg0: i32) -> (i32, i32) {
    %c0_i32 = arith.constant 0 : i32
    %c0_i32_0 = arith.constant 0 : i32
    return %arg0, %c0_i32 : i32, i32
  }
}

module attributes {stable_mosaic.version = 11 : i64} {
  func.func @_linear_kernel(%arg0: i32, %arg1: memref<8x32xf32, #tpu.memory_space<vmem>>, %arg2: memref<32x2xf32, #tpu.memory_space<vmem>>, %arg3: memref<1x2xf32, #tpu.memory_space<vmem>>, %arg4: memref<8x2xf32, #tpu.memory_space<vmem>>) attributes {dimension_semantics = [#tpu.dimension_semantics<parallel>], iteration_bounds = array<i64: 1>, scalar_prefetch = 0 : i64, scratch_operands = 0 : i64, tpu.core_type = #tpu.core_type<tc>, window_params = [{transform_indices = @transform_0, window_bounds = array<i64: 8, 32>}, {pipeline_mode = #tpu.pipeline_mode<synchronous>, transform_indices = @transform_1, window_bounds = array<i64: 32, 2>}, {pipeline_mode = #tpu.pipeline_mode<synchronous>, transform_indices = @transform_2, window_bounds = array<i64: 1, 2>}, {transform_indices = @transform_3, window_bounds = array<i64: 8, 2>}]} {
    %c0 = arith.constant 0 : index
    %c0_0 = arith.constant 0 : index
    %0 = vector.load %arg1[%c0, %c0_0] : memref<8x32xf32, #tpu.memory_space<vmem>>, vector<8x32xf32>
    %c0_1 = arith.constant 0 : index
    %c0_2 = arith.constant 0 : index
    %1 = vector.load %arg2[%c0_1, %c0_2] : memref<32x2xf32, #tpu.memory_space<vmem>>, vector<32x2xf32>
    %cst = arith.constant dense<0.000000e+00> : vector<8x2xf32>
    %2 = tpu.matmul %0, %1, %cst {dimension_numbers = #tpu.dot_dimension_numbers<[1], [0], [0], [1], [0, 0, 1, 1], [], []>} : vector<8x32xf32>, vector<32x2xf32>, vector<8x2xf32> -> vector<8x2xf32>
    %c0_3 = arith.constant 0 : index
    %c0_4 = arith.constant 0 : index
    %3 = vector.load %arg3[%c0_3, %c0_4] : memref<1x2xf32, #tpu.memory_space<vmem>>, vector<1x2xf32>
    %4 = vector.broadcast %3 : vector<1x2xf32> to vector<8x2xf32>
    %5 = arith.addf %2, %4 : vector<8x2xf32>
    %c0_5 = arith.constant 0 : index
    %c0_6 = arith.constant 0 : index
    %6 = vector.load %arg4[%c0_5, %c0_6] : memref<8x2xf32, #tpu.memory_space<vmem>>, vector<8x2xf32>
    tpu.vector_store %arg4[%c0_5, %c0_6], %5 {strides = array<i32>} : memref<8x2xf32, #tpu.memory_space<vmem>>, vector<8x2xf32>,
    return
  }
  func.func @transform_0(%arg0: i32) -> (i32, i32) {
    %c0_i32 = arith.constant 0 : i32
    %c0_i32_0 = arith.constant 0 : i32
    return %arg0, %c0_i32 : i32, i32
  }
  func.func @transform_1(%arg0: i32) -> (i32, i32) {
    %c0_i32 = arith.constant 0 : i32
    %c0_i32_0 = arith.constant 0 : i32
    %c0_i32_1 = arith.constant 0 : i32
    return %c0_i32, %c0_i32_0 : i32, i32
  }
  func.func @transform_2(%arg0: i32) -> (i32, i32) {
    %c0_i32 = arith.constant 0 : i32
    %c0_i32_0 = arith.constant 0 : i32
    %c0_i32_1 = arith.constant 0 : i32
    return %c0_i32, %c0_i32_0 : i32, i32
  }
  func.func @transform_3(%arg0: i32) -> (i32, i32) {
    %c0_i32 = arith.constant 0 : i32
    %c0_i32_0 = arith.constant 0 : i32
    return %arg0, %c0_i32 : i32, i32
  }
}

</mosaic_0001>

<bundles_post_ra>
// kernel: tpu_custom_call.1
= control target key start
LH: loop header
LB: loop body
LE: loop exit
PB: predicated region body
PF: predicated region fallthrough
CT: control target
= control target key end

     0   :  { %vm23_vm0 = vcmask 261120   ;;  %vm47_vm1 = vcmask 15360   ;;  %s96_s1 = inlined_call_operand.vmem [shape: f32[32,2], index: 1, kind: input, shape index: {}]   ;;  %s97_s2 = inlined_call_operand.vmem [shape: f32[1,2], index: 2, kind: input, shape index: {}]   ;;  %s98_s0 = inlined_call_operand.vmem [shape: f32[8,32], index: 0, kind: input, shape index: {}]   ;;  %s99_s3 = inlined_call_operand.vmem [shape: f32[8,2], index: 3, kind: output, shape index: {}]  }
   0x1   :  { %v18_v0 = vld [vmem:[%s96_s1 + $0x18] sm:$0xff]  ;;  %v17_v1 = vld [vmem:[%s96_s1 + $0x10] sm:$0xff]  ;;  %v16_v2 = vld [vmem:[%s96_s1 + $0x8] sm:$0xff] }
   0x2   :  { %39 = vmatpush.msra.mxu0 %v18_v0  ;;  %v15_v3 = vld [vmem:[%s96_s1] sm:$0xff] }
   0x3   :  { %v14_v4 = vld [vmem:[%s98_s0] sm:$0xff] }
   0x4   :  { %40 = vmatpush.msra.mxu0 %v17_v1  ;;  %v54_v5 = vld [vmem:[%s97_s2] ss:$0 sm:$0xff] }
   0x6   :  { %41 = vmatpush.msra.mxu0 %v16_v2 }
   0x8   :  { %42 = vmatpush.msra.mxu0 %v15_v3 }
   0x9   :  { %53 = vmatmul.msk.f32.vlgmr.msra.gmra.mxu0 %vm23_vm0, %v14_v4 }
  0x86   :  { %v44_v6 = vpop.f32.mrf.mxu0 }
  0x87   :  { %v45_v7 = vadd.f32 %v54_v5, %v44_v6 }
  0x89   :  { %48 = vst.msk [vmem:[%s99_s3] sm:$0xff] %vm47_vm1, %v45_v7 }

// kernel: tpu_custom_call.1
= control target key start
LH: loop header
LB: loop body
LE: loop exit
PB: predicated region body
PF: predicated region fallthrough
CT: control target
= control target key end

     0   :  { %vm23_vm0 = vcmask 261120   ;;  %vm47_vm1 = vcmask 15360   ;;  %s96_s1 = inlined_call_operand.vmem [shape: f32[32,2], index: 1, kind: input, shape index: {}]   ;;  %s97_s2 = inlined_call_operand.vmem [shape: f32[1,2], index: 2, kind: input, shape index: {}]   ;;  %s98_s0 = inlined_call_operand.vmem [shape: f32[8,32], index: 0, kind: input, shape index: {}]   ;;  %s99_s3 = inlined_call_operand.vmem [shape: f32[8,2], index: 3, kind: output, shape index: {}]  }
   0x1   :  { %v18_v0 = vld [vmem:[%s96_s1 + $0x18] sm:$0xff]  ;;  %v17_v1 = vld [vmem:[%s96_s1 + $0x10] sm:$0xff]  ;;  %v16_v2 = vld [vmem:[%s96_s1 + $0x8] sm:$0xff] }
   0x2   :  { %39 = vmatpush.msra.mxu0 %v18_v0  ;;  %v15_v3 = vld [vmem:[%s96_s1] sm:$0xff] }
   0x3   :  { %v14_v4 = vld [vmem:[%s98_s0] sm:$0xff] }
   0x4   :  { %40 = vmatpush.msra.mxu0 %v17_v1  ;;  %v54_v5 = vld [vmem:[%s97_s2] ss:$0 sm:$0xff] }
   0x6   :  { %41 = vmatpush.msra.mxu0 %v16_v2 }
   0x8   :  { %42 = vmatpush.msra.mxu0 %v15_v3 }
   0x9   :  { %53 = vmatmul.msk.f32.vlgmr.msra.gmra.mxu0 %vm23_vm0, %v14_v4 }
  0x86   :  { %v44_v6 = vpop.f32.mrf.mxu0 }
  0x87   :  { %v45_v7 = vadd.f32 %v54_v5, %v44_v6 }
  0x89   :  { %48 = vst.msk [vmem:[%s99_s3] sm:$0xff] %vm47_vm1, %v45_v7 }

</bundles_post_ra>
